<compile_context>
chip_gen: v5e
topology: v5e:2x2
jax: 0.10.0
libtpu: 0.0.40
codegen_flags: <defaults>
</compile_context>

<pallas_src>
import functools
import math

import numpy as np
import jax
import jax.numpy as jnp
from jax.experimental import pallas as pl
from jax.experimental.pallas import tpu as pltpu


def _round_up(x, m):
    return (x + m - 1) // m * m


def _proxy_anchor_kernel(xs_ref, p_ref, t_ref, out_ref, *,
                         alpha, mrg, nb_classes, b_actual, c_block,
                         c_padded, b_padded, mxu_dtype):
    cb = pl.program_id(0)
    b_pad = xs_ref.shape[0]

    # Proxy tile streamed in its HBM storage dtype (bf16 in bandwidth mode);
    # l2-normalize in f32 via rsqrt (EUP slot, no sqrt+divide).
    p = p_ref[...].astype(jnp.float32)                       # (c_block, D_pad)
    inv_norm = jax.lax.rsqrt(jnp.sum(p * p, axis=1, keepdims=True) + 1e-12)
    pn = (p * inv_norm).astype(mxu_dtype)

    # X arrives pre-l2-normalized and pre-scaled by alpha, so the MXU matmul
    # directly produces alpha*cos.  NT contraction (contract dim 1 with dim 1)
    # is the native transposed-rhs MXU form on Mosaic (same as q.k^T in flash
    # attention) -- no per-tile XLU relayout, and no extra HBM pass that a
    # wrapper-side pre-transpose of the proxy table would cost.
    scaled_cos = jax.lax.dot_general(
        xs_ref[...], pn,
        dimension_numbers=(((1,), (1,)), ((), ())),
        preferred_element_type=jnp.float32)                  # (B_pad, c_block)

    cls_ids = cb * c_block + jax.lax.broadcasted_iota(
        jnp.int32, (b_pad, c_block), 1)
    pos_mask = cls_ids == t_ref[...]      # padded rows carry label -1 -> never positive

    # Positives: exactly one per row -> masked lane reduce, then exponentiate
    # only a (B,1) vector.  exp(-alpha*(cos-mrg)) = exp(alpha*mrg - alpha*cos).
    a_mrg = float(alpha) * float(mrg)
    pos_cos = jnp.sum(jnp.where(pos_mask, scaled_cos, 0.0), axis=1, keepdims=True)
    pos_exp_row = jnp.exp(a_mrg - pos_cos)                   # (B_pad, 1)
    p_sim = jnp.sum(jnp.where(pos_mask, pos_exp_row, 0.0),
                    axis=0, keepdims=True)                   # (1, c_block)

    # Negatives: the single full-tile transcendental.  exp(alpha*mrg) is
    # folded out as a scalar factor applied after the sublane reduce.
    neg_base = jnp.exp(scaled_cos)
    neg_keep = jnp.logical_not(pos_mask)
    if c_padded:    # static: only emitted when the class axis is padded
        neg_keep = jnp.logical_and(neg_keep, cls_ids < nb_classes)
    if b_padded:    # static: only emitted when the batch axis is padded
        row_valid = jax.lax.broadcasted_iota(jnp.int32, (b_pad, 1), 0) < b_actual
        neg_keep = jnp.logical_and(neg_keep, row_valid)
    n_sim = jnp.sum(jnp.where(neg_keep, neg_base, 0.0),
                    axis=0, keepdims=True) * math.exp(a_mrg)  # (1, c_block)

    # Classes with no positive (and padded classes) contribute log(1+0)=0.
    pos_log = jnp.sum(jnp.log(1.0 + p_sim))
    neg_log = jnp.sum(jnp.log(1.0 + n_sim))

    # Lane-dense (8, 128) partial record: lane 0 = pos_log, lane 1 = neg_log.
    lane = jax.lax.broadcasted_iota(jnp.int32, (8, 128), 1)
    out_ref[...] = (jnp.where(lane == 0, pos_log, 0.0)
                    + jnp.where(lane == 1, neg_log, 0.0))


def proxy_anchor_loss(X, T, proxies, mrg=0.1, alpha=32.0, *,
                      c_block=1024, mxu_dtype=jnp.float32):
    """Forward pass of ProxyAnchor, matching the PyTorch module semantics."""
    B, D = X.shape
    C, D2 = proxies.shape
    assert D == D2, "embedding dims of X and proxies must match"

    B_pad = _round_up(B, 8)
    D_pad = _round_up(D, 128)
    stream_itemsize = int(np.dtype(mxu_dtype).itemsize)

    # --- class-block selection ------------------------------------------------
    c128 = _round_up(C, 128)
    cb = max(128, _round_up(min(int(c_block), c128), 128))
    nb128 = c128 // 128
    if nb128 >= 2:
        # Guarantee >= 2 grid steps so the "parallel" class axis shards across
        # both v7x TensorCores (only ~0.35 us extra on single-TC v5e/v6e).
        cb = min(cb, ((nb128 + 1) // 2) * 128)

    try:
        vmem_cap = int(pltpu.get_tpu_info().vmem_capacity_bytes)
    except Exception:
        vmem_cap = 64 * 1024 * 1024   # conservative fallback (v7x-sized VMEM)

    def _usage(c):
        return (2 * c * D_pad * stream_itemsize        # double-buffered proxy tile
                + 2 * B_pad * D_pad * stream_itemsize  # resident X (+ headroom)
                + 6 * B_pad * c * 4                    # f32/bool (B, c_block) temporaries
                + 4 * 8 * 128 * 4)
    budget = int(vmem_cap * 0.55)
    while cb > 128 and _usage(cb) > budget:
        cb -= 128

    C_pad = _round_up(C, cb)
    n_blocks = C_pad // cb

    # --- host-side prep (tiny XLA ops) -----------------------------------------
    # Hoist X l2-normalization and the alpha pre-scale out of the kernel; X is
    # then read once and the matmul yields alpha*cos directly.
    Xf = X.astype(jnp.float32)
    Xn = Xf * jax.lax.rsqrt(jnp.sum(Xf * Xf, axis=1, keepdims=True) + 1e-12)
    Xs = (jnp.float32(alpha) * Xn).astype(mxu_dtype)
    Xp = jnp.pad(Xs, ((0, B_pad - B), (0, D_pad - D)))

    # Proxies are stored and streamed in mxu_dtype: bf16 mode halves the HBM
    # traffic that dominates this kernel.  f32 mode keeps full accuracy
    # (alpha=32 amplifies cos quantization inside exp).
    Pp = jnp.pad(proxies.astype(mxu_dtype), ((0, C_pad - C), (0, D_pad - D)))
    Tp = jnp.pad(T.reshape(B, 1).astype(jnp.int32),
                 ((0, B_pad - B), (0, 0)), constant_values=-1)

    vmem_limit_bytes = int(min(int(vmem_cap * 0.75),
                               max(32 * 1024 * 1024, _usage(cb) + (16 << 20))))

    cost = pl.CostEstimate(
        flops=int(2 * B_pad * D_pad * C_pad),
        transcendentals=int(B_pad * C_pad            # negative exp tile
                            + n_blocks * B_pad       # per-block positive exps
                            + 2 * C_pad              # logs
                            + C_pad + B_pad),        # rsqrt norms
        bytes_accessed=int(Xp.size * Xp.dtype.itemsize      # X read once
                           + Pp.size * Pp.dtype.itemsize    # proxy stream
                           + Tp.size * Tp.dtype.itemsize
                           + n_blocks * 8 * 128 * 4))

    kernel = functools.partial(
        _proxy_anchor_kernel,
        alpha=float(alpha), mrg=float(mrg), nb_classes=int(C),
        b_actual=int(B), c_block=int(cb),
        c_padded=bool(C_pad > C), b_padded=bool(B_pad > B),
        mxu_dtype=mxu_dtype)

    out = pl.pallas_call(
        kernel,
        out_shape=jax.ShapeDtypeStruct((n_blocks * 8, 128), jnp.float32),
        grid_spec=pltpu.PrefetchScalarGridSpec(
            num_scalar_prefetch=0,
            grid=(n_blocks,),
            in_specs=[
                pl.BlockSpec((B_pad, D_pad), lambda c: (0, 0)),  # Xs (fetched once)
                pl.BlockSpec((cb, D_pad), lambda c: (c, 0)),     # proxy tile (streamed)
                # TODO(synk): sweep pipeline_mode=pl.Buffered(3) on the proxy
                # tile on hardware; kept at the default 2-deep for portability.
                pl.BlockSpec((B_pad, 1), lambda c: (0, 0)),      # labels
            ],
            out_specs=pl.BlockSpec((8, 128), lambda c: (c, 0)),  # scalar partials
        ),
        compiler_params=pltpu.CompilerParams(
            dimension_semantics=("parallel",),
            vmem_limit_bytes=vmem_limit_bytes),
        cost_estimate=cost,
    )(Xp, Pp, Tp)

    partials = out.reshape(n_blocks, 8, 128)[:, 0, :]
    pos_log_sum = jnp.sum(partials[:, 0])
    neg_log_sum = jnp.sum(partials[:, 1])

    # num_valid (count of distinct labels present) computed directly from T in
    # the wrapper -- the kernel never needed it.
    present = jnp.zeros((C,), jnp.bool_).at[T.astype(jnp.int32)].set(True, mode="drop")
    num_valid = jnp.sum(present).astype(jnp.float32)

    # NOTE: num_valid == 0 (no batch label falls in [0, C)) yields NaN, which
    # matches the PyTorch module's divide-by-zero behavior in that edge case.
    pos_term = pos_log_sum / num_valid
    neg_term = neg_log_sum / jnp.float32(C)
    return pos_term + neg_term


def _reference_loss(X, T, proxies, mrg=0.1, alpha=32.0):
    """Pure-JAX reference mirroring the PyTorch forward (f32 throughout)."""
    C = proxies.shape[0]
    l2 = lambda a: a / jnp.sqrt(jnp.sum(a * a, axis=1, keepdims=True) + 1e-12)
    cos = jnp.matmul(l2(X), l2(proxies).T, precision=jax.lax.Precision.HIGHEST)
    p_one_hot = jax.nn.one_hot(T, C, dtype=jnp.float32)
    pos_exp = jnp.exp(-alpha * (cos - mrg))
    neg_exp = jnp.exp(alpha * (cos + mrg))
    p_sim = jnp.sum(jnp.where(p_one_hot == 1.0, pos_exp, 0.0), axis=0)
    n_sim = jnp.sum(jnp.where(p_one_hot == 0.0, neg_exp, 0.0), axis=0)
    num_valid = jnp.sum((jnp.sum(p_one_hot, axis=0) != 0).astype(jnp.float32))
    pos_term = jnp.sum(jnp.log(1.0 + p_sim)) / num_valid
    neg_term = jnp.sum(jnp.log(1.0 + n_sim)) / C
    return pos_term + neg_term


if __name__ == "__main__":
    mrg, alpha = 0.1, 32.0

    # --- toy shapes consistent with the module: batch=8, embed=32, classes=16 ---
    B, D, C = 8, 32, 16
    kx, kt, kp = jax.random.split(jax.random.PRNGKey(0), 3)
    X = jax.random.normal(kx, (B, D), dtype=jnp.float32)
    T = jax.random.randint(kt, (B,), 0, C, dtype=jnp.int32)
    # proxies ~ kaiming_normal_(mode='fan_out'): std = sqrt(2 / nb_classes).
    proxies = jax.random.normal(kp, (C, D), dtype=jnp.float32) * jnp.sqrt(2.0 / C)

    loss = proxy_anchor_loss(X, T, proxies, mrg=mrg, alpha=alpha)
    jax.block_until_ready(loss)
    ref = _reference_loss(X, T, proxies, mrg=mrg, alpha=alpha)
    assert jnp.allclose(loss, ref, rtol=1e-4, atol=1e-4), (loss, ref)

    # --- multi-block path: C tiling, row/class padding masks, and the ">= 2
    #     blocks" megacore split (C=300 -> c_block=256, grid=(2,) by default) ---
    B2, D2, C2 = 22, 160, 300
    kx2, kt2, kp2 = jax.random.split(jax.random.PRNGKey(1), 3)
    X2 = jax.random.normal(kx2, (B2, D2), dtype=jnp.float32)
    T2 = jax.random.randint(kt2, (B2,), 0, C2, dtype=jnp.int32)
    P2 = jax.random.normal(kp2, (C2, D2), dtype=jnp.float32) * jnp.sqrt(2.0 / C2)

    loss2 = proxy_anchor_loss(X2, T2, P2, mrg=mrg, alpha=alpha)
    jax.block_until_ready(loss2)
    ref2 = _reference_loss(X2, T2, P2, mrg=mrg, alpha=alpha)
    assert jnp.allclose(loss2, ref2, rtol=1e-3, atol=1e-3), (loss2, ref2)

    # --- explicit small class blocks (grid=(3,) of 128) ---
    loss3 = proxy_anchor_loss(X2, T2, P2, mrg=mrg, alpha=alpha, c_block=128)
    jax.block_until_ready(loss3)
    assert jnp.allclose(loss3, ref2, rtol=1e-3, atol=1e-3), (loss3, ref2)

    # --- bf16 streaming mode (v6e/v7x bandwidth option): proxies and X are
    #     stored bf16 in HBM, halving the dominant DMA traffic.  Looser
    #     tolerance because alpha=32 amplifies bf16 cos quantization in exp. ---
    loss_bf16 = proxy_anchor_loss(X2, T2, P2, mrg=mrg, alpha=alpha,
                                  mxu_dtype=jnp.bfloat16)
    jax.block_until_ready(loss_bf16)
    assert bool(jnp.isfinite(loss_bf16))
    assert abs(float(loss_bf16) - float(ref2)) / abs(float(ref2)) < 0.15, (loss_bf16, ref2)

    print("KERNEL_OK")
</pallas_src>

<mosaic_0001>
module attributes {stable_mosaic.version = 11 : i64} {
  func.func @_proxy_anchor_kernel(%arg0: i32, %arg1: memref<8x128xf32, #tpu.memory_space<vmem>>, %arg2: memref<128x128xf32, #tpu.memory_space<vmem>>, %arg3: memref<8x1xi32, #tpu.memory_space<vmem>>, %arg4: memref<8x128xf32, #tpu.memory_space<vmem>>) attributes {dimension_semantics = [#tpu.dimension_semantics<parallel>], iteration_bounds = array<i64: 1>, scalar_prefetch = 0 : i64, scratch_operands = 0 : i64, tpu.core_type = #tpu.core_type<tc>, window_params = [{pipeline_mode = #tpu.pipeline_mode<synchronous>, transform_indices = @transform_0, window_bounds = array<i64: 8, 128>}, {transform_indices = @transform_1, window_bounds = array<i64: 128, 128>}, {pipeline_mode = #tpu.pipeline_mode<synchronous>, transform_indices = @transform_2, window_bounds = array<i64: 8, 1>}, {transform_indices = @transform_3, window_bounds = array<i64: 8, 128>}]} {
    %c0 = arith.constant 0 : index
    %c0_0 = arith.constant 0 : index
    %0 = vector.load %arg2[%c0, %c0_0] : memref<128x128xf32, #tpu.memory_space<vmem>>, vector<128x128xf32>
    %1 = arith.mulf %0, %0 : vector<128x128xf32>
    %cst = arith.constant dense<0.000000e+00> : vector<128xf32>
    %2 = vector.multi_reduction <add>, %1, %cst [1] : vector<128x128xf32> to vector<128xf32>
    %3 = vector.shape_cast %2 : vector<128xf32> to vector<128x1xf32>
    %cst_1 = arith.constant 9.99999996E-13 : f32
    %4 = vector.broadcast %cst_1 : f32 to vector<128x1xf32>
    %5 = arith.addf %3, %4 : vector<128x1xf32>
    %6 = math.rsqrt %5 : vector<128x1xf32>
    %7 = vector.broadcast %6 : vector<128x1xf32> to vector<128x128xf32>
    %8 = arith.mulf %0, %7 : vector<128x128xf32>
    %c0_2 = arith.constant 0 : index
    %c0_3 = arith.constant 0 : index
    %9 = vector.load %arg1[%c0_2, %c0_3] : memref<8x128xf32, #tpu.memory_space<vmem>>, vector<8x128xf32>
    %cst_4 = arith.constant dense<0.000000e+00> : vector<8x128xf32>
    %10 = tpu.matmul %9, %8, %cst_4 {dimension_numbers = #tpu.dot_dimension_numbers<[1], [1], [0], [0], [0, 0, 1, 0], [], []>} : vector<8x128xf32>, vector<128x128xf32>, vector<8x128xf32> -> vector<8x128xf32>
    %c128_i32 = arith.constant 128 : i32
    %11 = arith.muli %arg0, %c128_i32 : i32
    %12 = tpu.iota {dimensions = array<i32: 1>} : vector<8x128xi32>
    %13 = vector.broadcast %11 : i32 to vector<8x128xi32>
    %14 = arith.addi %13, %12 : vector<8x128xi32>
    %c0_5 = arith.constant 0 : index
    %c0_6 = arith.constant 0 : index
    %15 = vector.load %arg3[%c0_5, %c0_6] : memref<8x1xi32, #tpu.memory_space<vmem>>, vector<8x1xi32>
    %16 = vector.broadcast %15 : vector<8x1xi32> to vector<8x128xi32>
    %17 = arith.cmpi eq, %14, %16 : vector<8x128xi32>
    %cst_7 = arith.constant 0.000000e+00 : f32
    %18 = vector.broadcast %cst_7 : f32 to vector<8x128xf32>
    %19 = arith.select %17, %10, %18 : vector<8x128xi1>, vector<8x128xf32>
    %cst_8 = arith.constant dense<0.000000e+00> : vector<8xf32>
    %20 = vector.multi_reduction <add>, %19, %cst_8 [1] : vector<8x128xf32> to vector<8xf32>
    %21 = vector.shape_cast %20 : vector<8xf32> to vector<8x1xf32>
    %cst_9 = arith.constant 3.200000e+00 : f32
    %22 = vector.broadcast %cst_9 : f32 to vector<8x1xf32>
    %23 = arith.subf %22, %21 : vector<8x1xf32>
    %24 = math.exp %23 : vector<8x1xf32>
    %cst_10 = arith.constant 0.000000e+00 : f32
    %25 = vector.shape_cast %24 : vector<8x1xf32> to vector<8x1xf32>
    %26 = vector.broadcast %25 : vector<8x1xf32> to vector<8x128xf32>
    %27 = vector.broadcast %cst_10 : f32 to vector<8x128xf32>
    %28 = arith.select %17, %26, %27 : vector<8x128xi1>, vector<8x128xf32>
    %cst_11 = arith.constant dense<0.000000e+00> : vector<128xf32>
    %29 = vector.multi_reduction <add>, %28, %cst_11 [0] : vector<8x128xf32> to vector<128xf32>
    %30 = vector.shape_cast %29 : vector<128xf32> to vector<1x128xf32>
    %31 = math.exp %10 : vector<8x128xf32>
    %cst_12 = arith.constant dense<true> : vector<8x128xi1>
    %32 = arith.xori %17, %cst_12 : vector<8x128xi1>
    %c16_i32 = arith.constant 16 : i32
    %33 = vector.broadcast %c16_i32 : i32 to vector<8x128xi32>
    %34 = arith.cmpi slt, %14, %33 : vector<8x128xi32>
    %35 = arith.andi %32, %34 : vector<8x128xi1>
    %cst_13 = arith.constant 0.000000e+00 : f32
    %36 = vector.broadcast %cst_13 : f32 to vector<8x128xf32>
    %37 = arith.select %35, %31, %36 : vector<8x128xi1>, vector<8x128xf32>
    %cst_14 = arith.constant dense<0.000000e+00> : vector<128xf32>
    %38 = vector.multi_reduction <add>, %37, %cst_14 [0] : vector<8x128xf32> to vector<128xf32>
    %39 = vector.shape_cast %38 : vector<128xf32> to vector<1x128xf32>
    %cst_15 = arith.constant 24.5325298 : f32
    %40 = vector.broadcast %cst_15 : f32 to vector<1x128xf32>
    %41 = arith.mulf %39, %40 : vector<1x128xf32>
    %cst_16 = arith.constant 1.000000e+00 : f32
    %42 = vector.broadcast %cst_16 : f32 to vector<1x128xf32>
    %43 = arith.addf %42, %30 : vector<1x128xf32>
    %44 = math.log %43 : vector<1x128xf32>
    %45 = vector.shape_cast %44 : vector<1x128xf32> to vector<1x1x128xf32>
    %cst_17 = arith.constant dense<0.000000e+00> : vector<1xf32>
    %46 = vector.multi_reduction <add>, %45, %cst_17 [1, 2] : vector<1x1x128xf32> to vector<1xf32>
    %47 = vector.shape_cast %46 : vector<1xf32> to vector<1x1x1xf32>
    %48 = vector.extract %47[0, 0, 0] : f32 from vector<1x1x1xf32>
    %cst_18 = arith.constant 1.000000e+00 : f32
    %49 = vector.broadcast %cst_18 : f32 to vector<1x128xf32>
    %50 = arith.addf %49, %41 : vector<1x128xf32>
    %51 = math.log %50 : vector<1x128xf32>
    %52 = vector.shape_cast %51 : vector<1x128xf32> to vector<1x1x128xf32>
    %cst_19 = arith.constant dense<0.000000e+00> : vector<1xf32>
    %53 = vector.multi_reduction <add>, %52, %cst_19 [1, 2] : vector<1x1x128xf32> to vector<1xf32>
    %54 = vector.shape_cast %53 : vector<1xf32> to vector<1x1x1xf32>
    %55 = vector.extract %54[0, 0, 0] : f32 from vector<1x1x1xf32>
    %56 = tpu.iota {dimensions = array<i32: 1>} : vector<8x128xi32>
    %c0_i32 = arith.constant 0 : i32
    %57 = vector.broadcast %c0_i32 : i32 to vector<8x128xi32>
    %58 = arith.cmpi eq, %56, %57 : vector<8x128xi32>
    %cst_20 = arith.constant 0.000000e+00 : f32
    %59 = vector.broadcast %48 : f32 to vector<8x128xf32>
    %60 = vector.broadcast %cst_20 : f32 to vector<8x128xf32>
    %61 = arith.select %58, %59, %60 : vector<8x128xi1>, vector<8x128xf32>
    %c1_i32 = arith.constant 1 : i32
    %62 = vector.broadcast %c1_i32 : i32 to vector<8x128xi32>
    %63 = arith.cmpi eq, %56, %62 : vector<8x128xi32>
    %cst_21 = arith.constant 0.000000e+00 : f32
    %64 = vector.broadcast %55 : f32 to vector<8x128xf32>
    %65 = vector.broadcast %cst_21 : f32 to vector<8x128xf32>
    %66 = arith.select %63, %64, %65 : vector<8x128xi1>, vector<8x128xf32>
    %67 = arith.addf %61, %66 : vector<8x128xf32>
    %c0_22 = arith.constant 0 : index
    %c0_23 = arith.constant 0 : index
    %68 = vector.load %arg4[%c0_22, %c0_23] : memref<8x128xf32, #tpu.memory_space<vmem>>, vector<8x128xf32>
    tpu.vector_store %arg4[%c0_22, %c0_23], %67 {strides = array<i32>} : memref<8x128xf32, #tpu.memory_space<vmem>>, vector<8x128xf32>,
    return
  }
  func.func @transform_0(%arg0: i32) -> (i32, i32) {
    %c0_i32 = arith.constant 0 : i32
    %c0_i32_0 = arith.constant 0 : i32
    %c0_i32_1 = arith.constant 0 : i32
    return %c0_i32, %c0_i32_0 : i32, i32
  }
  func.func @transform_1(%arg0: i32) -> (i32, i32) {
    %c0_i32 = arith.constant 0 : i32
    %c0_i32_0 = arith.constant 0 : i32
    return %arg0, %c0_i32 : i32, i32
  }
  func.func @transform_2(%arg0: i32) -> (i32, i32) {
    %c0_i32 = arith.constant 0 : i32
    %c0_i32_0 = arith.constant 0 : i32
    %c0_i32_1 = arith.constant 0 : i32
    return %c0_i32, %c0_i32_0 : i32, i32
  }
  func.func @transform_3(%arg0: i32) -> (i32, i32) {
    %c0_i32 = arith.constant 0 : i32
    %c0_i32_0 = arith.constant 0 : i32
    return %arg0, %c0_i32 : i32, i32
  }
}

</mosaic_0001>

<bundles_post_ra>
// kernel: tpu_custom_call.1
= control target key start
LH: loop header
LB: loop body
LE: loop exit
PB: predicated region body
PF: predicated region fallthrough
CT: control target
= control target key end

     0   :  { %8 = vsyncpa [#allocation3], 0  ;;  %s843_s0 = inlined_call_operand.vmem [shape: f32[8,128], index: 0, kind: input, shape index: {}]   ;;  %s844_s1 = inlined_call_operand.hbm [shape: f32[128,128], index: 1, kind: input, shape index: {}]   ;;  %s845_s2 = inlined_call_operand.vmem [shape: s32[8,1], index: 2, kind: input, shape index: {}]   ;;  %s846_s3 = inlined_call_operand.hbm [shape: f32[8,128], index: 3, kind: output, shape index: {}]  }
   0x1   :  { %9 = vsyncpa [#allocation4], 0  ;;  %s16_s14 = sshll.u32 %s844_s1, 4  ;;  %s500_s15 = smov [#allocation2]   ;;  %s17_s14 = int_to_ptr.hbm [resolvable:$true] %s16_s14 }
   0x2   :  { %s18_s16 = sshll.u32 %s500_s15, 4  ;;  %s501_s17 = smov 128   ;;  %s19_s16 = int_to_ptr.vmem [resolvable:$true] %s18_s16 }
   0x3   :  { %s502_s18 = smov 8  }
   0x4   :  { %24 = dma.hbm_to_vmem [thread:$0]  %s17_s14, 2048, %s19_s16, [#allocation3], %s501_s17, %s501_s17, %s502_s18  }
   0x5   :  { %496 = dma.done.wait [#allocation3], 2048  }
   0x6   :  { %497 = vsyncadd [#allocation3], 4294965248  ;;  %v529_v0 = vld [vmem:[#allocation2 + $0x78] sm:$0xff]  ;;  %v531_v1 = vld [vmem:[#allocation2 + $0x68] sm:$0xff]  ;;  %s386_s23 = sshll.u32 %s846_s3, 4  ;;  %s505_s25 = smov [#allocation5]   ;;  %s387_s23 = int_to_ptr.hbm [resolvable:$true] %s386_s23 }
   0x7   :  { %v533_v2 = vld [vmem:[#allocation2 + $0x58] sm:$0xff]  ;;  %v62_v3 = vmul.f32 %v529_v0, %v529_v0  ;;  %v60_v4 = vmul.f32 %v531_v1, %v531_v1  ;;  %v541_v6 = vld [vmem:[#allocation2 + $0x70] sm:$0xff]  ;;  %v543_v7 = vld [vmem:[#allocation2 + $0x60] sm:$0xff]  ;;  %s384_s26 = sshll.u32 %s505_s25, 4  ;;  %s385_s26 = int_to_ptr.vmem [resolvable:$true] %s384_s26 }
   0x8   :  { %v58_v5 = vmul.f32 %v533_v2, %v533_v2  ;;  %v545_v8 = vld [vmem:[#allocation2 + $0x50] sm:$0xff]  ;;  %v61_v9 = vmul.f32 %v541_v6, %v541_v6  ;;  %v59_v10 = vmul.f32 %v543_v7, %v543_v7  ;;  %v553_v12 = vld [vmem:[#allocation2 + $0x48] sm:$0xff]  ;;  %v555_v13 = vld [vmem:[#allocation2 + $0x40] sm:$0xff] }
   0x9   :  { %93 = vadd.xlane.f32.xlu0 %v62_v3  ;;  %89 = vadd.xlane.f32.xlu1 %v60_v4  ;;  %v57_v11 = vmul.f32 %v545_v8, %v545_v8  ;;  %v557_v14 = vld [vmem:[#allocation2 + $0x38] sm:$0xff]  ;;  %v56_v15 = vmul.f32 %v553_v12, %v553_v12  ;;  %v55_v16 = vmul.f32 %v555_v13, %v555_v13  ;;  %v565_v18 = vld [vmem:[#allocation2 + $0x30] sm:$0xff]  ;;  %v567_v19 = vld [vmem:[#allocation2 + $0x28] sm:$0xff] }
   0xa   :  { %85 = vadd.xlane.f32.xlu2 %v58_v5  ;;  %v54_v17 = vmul.f32 %v557_v14, %v557_v14  ;;  %v569_v20 = vld [vmem:[#allocation2 + $0x20] sm:$0xff]  ;;  %v53_v21 = vmul.f32 %v565_v18, %v565_v18  ;;  %v52_v22 = vmul.f32 %v567_v19, %v567_v19  ;;  %v577_v24 = vld [vmem:[#allocation2 + $0x18] sm:$0xff]  ;;  %v579_v25 = vld [vmem:[#allocation2 + $0x10] sm:$0xff] }
   0xb   :  { %v51_v23 = vmul.f32 %v569_v20, %v569_v20  ;;  %v581_v26 = vld [vmem:[#allocation2 + $0x8] sm:$0xff]  ;;  %v50_v27 = vmul.f32 %v577_v24, %v577_v24  ;;  %v49_v28 = vmul.f32 %v579_v25, %v579_v25  ;;  %v589_v30 = vld [vmem:[#allocation2] sm:$0xff] }
   0xc   :  { %v48_v29 = vmul.f32 %v581_v26, %v581_v26  ;;  %v47_v31 = vmul.f32 %v589_v30, %v589_v30 }
  0x11   :  { %91 = vadd.xlane.f32.xlu0 %v61_v9  ;;  %87 = vadd.xlane.f32.xlu1 %v59_v10 }
  0x12   :  { %83 = vadd.xlane.f32.xlu2 %v57_v11 }
  0x19   :  { %81 = vadd.xlane.f32.xlu0 %v56_v15  ;;  %79 = vadd.xlane.f32.xlu1 %v55_v16 }
  0x1a   :  { %77 = vadd.xlane.f32.xlu2 %v54_v17 }
  0x21   :  { %75 = vadd.xlane.f32.xlu0 %v53_v21  ;;  %73 = vadd.xlane.f32.xlu1 %v52_v22 }
  0x22   :  { %71 = vadd.xlane.f32.xlu2 %v51_v23 }
  0x29   :  { %69 = vadd.xlane.f32.xlu0 %v50_v27  ;;  %67 = vadd.xlane.f32.xlu1 %v49_v28 }
  0x2a   :  { %65 = vadd.xlane.f32.xlu2 %v48_v29 }
  0x31   :  { %63 = vadd.xlane.f32.xlu0 %v47_v31 }
  0x7c   :  { %v94_v32 = vpop.xlane.xlu0 %93  ;;  %v90_v33 = vpop.xlane.xlu1 %89 }
  0x7d   :  { %v110_v34 = vadd.f32 1e-12, %v94_v32  ;;  %v593_v35 = vadd.f32 1e-12, %v90_v33  ;;  %v86_v36 = vpop.xlane.xlu2 %85 }
  0x7e   :  { %v595_v37 = vadd.f32 1e-12, %v86_v36 }
  0x7f   :  { %408 = vrsqrt.f32 %v110_v34  ;;  %vm267_vm1 = vweird.f32 %v110_v34  ;;  %vm247_vm3 = vweird.f32 %v593_v35 }
  0x80   :  { %410 = vrsqrt.f32 %v593_v35  ;;  %vm227_vm11 = vweird.f32 %v595_v37 }
  0x81   :  { %412 = vrsqrt.f32 %v595_v37 }
  0x84   :  { %v92_v38 = vpop.xlane.xlu0 %91  ;;  %v88_v39 = vpop.xlane.xlu1 %87 }
  0x85   :  { %v409_v40 = vpop.eup %408  ;;  %v109_v41 = vadd.f32 1e-12, %v92_v38  ;;  %v599_v42 = vadd.f32 1e-12, %v88_v39  ;;  %v84_v43 = vpop.xlane.xlu2 %83 }
  0x86   :  { %v601_v44 = vpop.eup %410  ;;  %v262_v45 = vmul.f32 %v409_v40, %v110_v34  ;;  %v603_v46 = vadd.f32 1e-12, %v84_v43  ;;  %vm268_vm0 = vweird.f32 %v409_v40 }
  0x87   :  { %v242_v47 = vmul.f32 %v601_v44, %v593_v35  ;;  %414 = vrsqrt.f32 %v109_v41  ;;  %v608_v49 = vpop.eup %412  ;;  %vm269_vm2 = vmor %vm267_vm1, %vm268_vm0  ;;  %vm257_vm5 = vweird.f32 %v109_v41  ;;  %vm248_vm6 = vweird.f32 %v601_v44 }
  0x88   :  { %v263_v48 = vmul.f32 %v409_v40, %v262_v45  ;;  %416 = vrsqrt.f32 %v599_v42  ;;  %v222_v52 = vmul.f32 %v608_v49, %v595_v37  ;;  %vm237_vm8 = vweird.f32 %v599_v42  ;;  %vm249_vm9 = vmor %vm247_vm3, %vm248_vm6 }
  0x89   :  { %418 = vrsqrt.f32 %v603_v46  ;;  %v243_v51 = vmul.f32 %v601_v44, %v242_v47  ;;  %vm228_vm12 = vweird.f32 %v608_v49  ;;  %vm217_vm15 = vweird.f32 %v603_v46 }
  0x8a   :  { %v264_v50 = vmul.f32 0.5, %v263_v48  ;;  %v223_v5 = vmul.f32 %v608_v49, %v222_v52  ;;  %vm676_vm14 = vmor %vm227_vm11, %vm228_vm12 }
  0x8b   :  { %v244_v61 = vmul.f32 0.5, %v243_v51 }
  0x8c   :  { %v82_v53 = vpop.xlane.xlu0 %81  ;;  %v80_v54 = vpop.xlane.xlu1 %79  ;;  %v265_v55 = vsub.f32 1.5, %v264_v50  ;;  %v224_v27 = vmul.f32 0.5, %v223_v5 }
  0x8d   :  { %v415_v56 = vpop.eup %414  ;;  %v614_v57 = vadd.f32 1e-12, %v82_v53  ;;  %v616_v58 = vadd.f32 1e-12, %v80_v54  ;;  %v78_v59 = vpop.xlane.xlu2 %77  ;;  %v245_v17 = vsub.f32 1.5, %v244_v61 }
  0x8e   :  { %v618_v60 = vpop.eup %416  ;;  %v252_v62 = vmul.f32 %v415_v56, %v109_v41  ;;  %v266_v63 = vmul.f32 %v409_v40, %v265_v55  ;;  %v626_v10 = vadd.f32 1e-12, %v78_v59  ;;  %vm258_vm4 = vweird.f32 %v415_v56 }
  0x8f   :  { %v620_v3 = vpop.eup %418  ;;  %v232_v4 = vmul.f32 %v618_v60, %v599_v42  ;;  %420 = vrsqrt.f32 %v614_v57  ;;  %v246_v39 = vmul.f32 %v601_v44, %v245_v17  ;;  %vm259_vm7 = vmor %vm257_vm5, %vm258_vm4  ;;  %v225_v43 = vsub.f32 1.5, %v224_v27 }
  0x90   :  { %v253_v9 = vmul.f32 %v415_v56, %v252_v62  ;;  %v212_v15 = vmul.f32 %v620_v3, %v603_v46  ;;  %422 = vrsqrt.f32 %v616_v58  ;;  %v270_v16 = vsel %vm269_vm2, %v409_v40, %v266_v63 }
  0x91   :  { %v233_v11 = vmul.f32 %v618_v60, %v232_v4  ;;  %v286_v22 = vmul.f32 %v270_v16, %v529_v0  ;;  %424 = vrsqrt.f32 %v626_v10  ;;  %vm238_vm10 = vweird.f32 %v618_v60 }
  0x92   :  { %v254_v21 = vmul.f32 0.5, %v253_v9  ;;  %v213_v32 = vmul.f32 %v620_v3, %v212_v15  ;;  %v250_v54 = vsel %vm249_vm9, %v601_v44, %v246_v39  ;;  %vm239_vm13 = vmor %vm237_vm8, %vm238_vm10  ;;  %v226_v44 = vmul.f32 %v608_v49, %v225_v43 }
  0x93   :  { %v234_v23 = vmul.f32 0.5, %v233_v11  ;;  %288 = vmatpush.xpose.msra.mxu0 %v286_v22  ;;  %vm218_vm0 = vweird.f32 %v620_v3  ;;  %vm207_vm2 = vweird.f32 %v614_v57  ;;  %vm197_vm4 = vweird.f32 %v616_v58 }
  0x94   :  { %v255_v28 = vsub.f32 1.5, %v254_v21  ;;  %v76_v29 = vpop.xlane.xlu0 %75  ;;  %v74_v34 = vpop.xlane.xlu1 %73  ;;  %v214_v47 = vmul.f32 0.5, %v213_v32  ;;  %vm697_vm1 = vmor %vm217_vm15, %vm218_vm0  ;;  %vm187_vm8 = vweird.f32 %v626_v10 }
  0x95   :  { %v635_v31 = vpop.eup %420  ;;  %v638_v33 = vadd.f32 1e-12, %v76_v29  ;;  %v235_v0 = vsub.f32 1.5, %v234_v23  ;;  %v647_v41 = vadd.f32 1e-12, %v74_v34  ;;  %v72_v50 = vpop.xlane.xlu2 %71 }
  0x96   :  { %v202_v36 = vmul.f32 %v635_v31, %v614_v57  ;;  %v256_v38 = vmul.f32 %v415_v56, %v255_v28  ;;  %v644_v40 = vpop.eup %422  ;;  %v215_v59 = vsub.f32 1.5, %v214_v47  ;;  %vm208_vm3 = vweird.f32 %v635_v31 }
  0x97   :  { %426 = vrsqrt.f32 %v638_v33  ;;  %v656_v51 = vpop.eup %424  ;;  %v192_v53 = vmul.f32 %v644_v40, %v616_v58  ;;  %v236_v55 = vmul.f32 %v618_v60, %v235_v0  ;;  %vm198_vm5 = vweird.f32 %v644_v40  ;;  %vm209_vm6 = vmor %vm207_vm2, %vm208_vm3 }
  0x98   :  { %v260_v45 = vsel %vm259_vm7, %v415_v56, %v256_v38  ;;  %v203_v52 = vmul.f32 %v635_v31, %v202_v36  ;;  %428 = vrsqrt.f32 %v647_v41  ;;  %v182_v35 = vmul.f32 %v656_v51, %v626_v10  ;;  %vm735_vm7 = vmor %vm197_vm4, %vm198_vm5 }
  0x99   :  { %v285_v48 = vmul.f32 %v260_v45, %v541_v6  ;;  %v666_v6 = vadd.f32 1e-12, %v72_v50  ;;  %v284_v56 = vmul.f32 %v250_v54, %v531_v1  ;;  %v193_v37 = vmul.f32 %v644_v40, %v192_v53 }
  0x9a   :  { %v204_v61 = vmul.f32 0.5, %v203_v52  ;;  %v240_v63 = vsel %vm239_vm13, %v618_v60, %v236_v55  ;;  %v183_v1 = vmul.f32 %v656_v51, %v182_v35  ;;  %v230_v60 = vsel %vm676_vm14, %v608_v49, %v226_v44 }
  0x9b   :  { %289 = vmatpush.xpose.msra.mxu0 %v285_v48  ;;  %430 = vrsqrt.f32 %v666_v6  ;;  %v283_v9 = vmul.f32 %v240_v63, %v543_v7  ;;  %v194_v16 = vmul.f32 0.5, %v193_v37  ;;  %v216_v21 = vmul.f32 %v620_v3, %v215_v59 }
  0x9c   :  { %v70_v62 = vpop.xlane.xlu0 %69  ;;  %v205_v15 = vsub.f32 1.5, %v204_v61  ;;  %v68_v17 = vpop.xlane.xlu1 %67  ;;  %v282_v7 = vmul.f32 %v230_v60, %v533_v2  ;;  %v184_v49 = vmul.f32 0.5, %v183_v1  ;;  %vm188_vm9 = vweird.f32 %v656_v51 }
  0x9d   :  { %v680_v5 = vpop.eup %426  ;;  %v686_v42 = vadd.f32 1e-12, %v70_v62  ;;  %v707_v27 = vadd.f32 1e-12, %v68_v17  ;;  %v66_v28 = vpop.xlane.xlu2 %65  ;;  %v195_v32 = vsub.f32 1.5, %v194_v16  ;;  %v220_v2 = vsel %vm697_vm1, %v620_v3, %v216_v21  ;;  %vm754_vm10 = vmor %vm187_vm8, %vm188_vm9 }
  0x9e   :  { %v692_v11 = vpop.eup %428  ;;  %v172_v46 = vmul.f32 %v680_v5, %v638_v33  ;;  %v206_v0 = vmul.f32 %v635_v31, %v205_v15  ;;  %v717_v36 = vadd.f32 1e-12, %v66_v28  ;;  %v281_v43 = vmul.f32 %v220_v2, %v545_v8 }
  0x9f   :  { %290 = vmatpush.xpose.msra.mxu0 %v284_v56  ;;  %v162_v23 = vmul.f32 %v692_v11, %v647_v41  ;;  %432 = vrsqrt.f32 %v686_v42  ;;  %v185_v3 = vsub.f32 1.5, %v184_v49  ;;  %v196_v50 = vmul.f32 %v644_v40, %v195_v32 }
  0xa0   :  { %v173_v34 = vmul.f32 %v680_v5, %v172_v46  ;;  %434 = vrsqrt.f32 %v707_v27  ;;  %v210_v48 = vsel %vm209_vm6, %v635_v31, %v206_v0  ;;  %vm177_vm11 = vweird.f32 %v638_v33 }
  0xa1   :  { %v709_v29 = vpop.eup %430  ;;  %v163_v38 = vmul.f32 %v692_v11, %v162_v23  ;;  %436 = vrsqrt.f32 %v717_v36  ;;  %v280_v54 = vmul.f32 %v210_v48, %v553_v12  ;;  %v200_v35 = vsel %vm735_vm7, %v644_v40, %v196_v50  ;;  %v287_v50 = vld [vmem:[%s843_s0] sm:$0xff] }
  0xa2   :  { %v152_v39 = vmul.f32 %v709_v29, %v666_v6  ;;  %v174_v45 = vmul.f32 0.5, %v173_v34  ;;  %v186_v10 = vmul.f32 %v656_v51, %v185_v3  ;;  %vm178_vm12 = vweird.f32 %v680_v5 }
  0xa3   :  { %291 = vmatpush.xpose.msra.mxu0 %v283_v9  ;;  %v164_v8 = vmul.f32 0.5, %v163_v38  ;;  %v279_v61 = vmul.f32 %v200_v35, %v555_v13  ;;  %vm771_vm13 = vmor %vm177_vm11, %vm178_vm12  ;;  %vm167_vm14 = vweird.f32 %v647_v41  ;;  %vm168_vm15 = vweird.f32 %v692_v11  ;;  %v313_v41 = vld [vmem:[%s845_s2] sm:$0xff] }
  0xa4   :  { %v64_v47 = vpop.xlane.xlu0 %63  ;;  %v153_v57 = vmul.f32 %v709_v29, %v152_v39  ;;  %v175_v55 = vsub.f32 1.5, %v174_v45  ;;  %v190_v63 = vsel %vm754_vm10, %v656_v51, %v186_v10  ;;  %vm157_vm0 = vweird.f32 %v666_v6  ;;  %vm789_vm1 = vmor %vm167_vm14, %vm168_vm15 }
  0xa5   :  { %v731_v52 = vpop.eup %432  ;;  %v743_v31 = vadd.f32 1e-12, %v64_v47  ;;  %v165_v12 = vsub.f32 1.5, %v164_v8  ;;  %v278_v9 = vmul.f32 %v190_v63, %v557_v14  ;;  %vm158_vm2 = vweird.f32 %v709_v29 }
  0xa6   :  { %v142_v58 = vmul.f32 %v731_v52, %v686_v42  ;;  %v752_v56 = vpop.eup %434  ;;  %v154_v59 = vmul.f32 0.5, %v153_v57  ;;  %v176_v33 = vmul.f32 %v680_v5, %v175_v55  ;;  %v503_v14 = vmov 0   ;;  %vm159_vm3 = vmor %vm157_vm0, %vm158_vm2 }
  0xa7   :  { %292 = vmatpush.xpose.msra.mxu0 %v282_v7  ;;  %438 = vrsqrt.f32 %v743_v31  ;;  %v762_v40 = vpop.eup %436  ;;  %v132_v62 = vmul.f32 %v752_v56, %v707_v27  ;;  %v166_v60 = vmul.f32 %v692_v11, %v165_v12  ;;  %406 = vset.pattern.permute.xlu1 %v503_v14  ;;  %vm147_vm4 = vweird.f32 %v686_v42 }
  0xa8   :  { %v143_v37 = vmul.f32 %v731_v52, %v142_v58  ;;  %v155_v13 = vsub.f32 1.5, %v154_v59  ;;  %v122_v1 = vmul.f32 %v762_v40, %v717_v36  ;;  %v180_v16 = vsel %vm771_vm13, %v680_v5, %v176_v33  ;;  %315 = vperm.xlu1 %406, %v313_v41   ;;  %407 = vset.pattern.permute.xlu0 %v503_v14 }
  0xa9   :  { %v133_v15 = vmul.f32 %v752_v56, %v132_v62  ;;  %v277_v21 = vmul.f32 %v180_v16, %v565_v18  ;;  %v170_v28 = vsel %vm789_vm1, %v692_v11, %v166_v60  ;;  %vm148_vm5 = vweird.f32 %v731_v52 }
  0xaa   :  { %v144_v51 = vmul.f32 0.5, %v143_v37  ;;  %v123_v5 = vmul.f32 %v762_v40, %v122_v1  ;;  %v156_v22 = vmul.f32 %v709_v29, %v155_v13  ;;  %v276_v18 = vmul.f32 %v170_v28, %v567_v19  ;;  %vm149_vm6 = vmor %vm147_vm4, %vm148_vm5 }
  0xab   :  { %293 = vmatpush.xpose.msra.mxu0 %v281_v43  ;;  %v134_v49 = vmul.f32 0.5, %v133_v15  ;;  %vm137_vm7 = vweird.f32 %v707_v27  ;;  %vm138_vm8 = vweird.f32 %v752_v56  ;;  %vm127_vm10 = vweird.f32 %v717_v36 }
  0xac   :  { %v145_v7 = vsub.f32 1.5, %v144_v51  ;;  %v160_v32 = vsel %vm159_vm3, %v709_v29, %v156_v22  ;;  %v124_v2 = vmul.f32 0.5, %v123_v5  ;;  %vm139_vm9 = vmor %vm137_vm7, %vm138_vm8  ;;  %vm128_vm11 = vweird.f32 %v762_v40 }
  0xad   :  { %v439_v46 = vpop.eup %438  ;;  %v135_v34 = vsub.f32 1.5, %v134_v49  ;;  %v275_v6 = vmul.f32 %v160_v32, %v569_v20  ;;  %vm129_vm12 = vmor %vm127_vm10, %vm128_vm11  ;;  %vm117_vm13 = vweird.f32 %v743_v31  ;;  %vm504_vm2 = vmmov 1  }
  0xae   :  { %v112_v23 = vmul.f32 %v439_v46, %v743_v31  ;;  %v146_v38 = vmul.f32 %v731_v52, %v145_v7  ;;  %v125_v42 = vsub.f32 1.5, %v124_v2  ;;  %vm118_vm14 = vweird.f32 %v439_v46 }
  0xaf   :  { %294 = vmatpush.xpose.msra.mxu0 %v280_v54  ;;  %v136_v19 = vmul.f32 %v752_v56, %v135_v34  ;;  %vm119_vm15 = vmor %vm117_vm13, %vm118_vm14  ;;  %vm347_vm5 = vcmask 1040384  }
  0xb0   :  { %v113_v0 = vmul.f32 %v439_v46, %v112_v23  ;;  %v150_v39 = vsel %vm149_vm6, %v731_v52, %v146_v38  ;;  %v126_v3 = vmul.f32 %v762_v40, %v125_v42  ;;  %v309_v52 = vlaneseq }
  0xb1   :  { %v274_v29 = vmul.f32 %v150_v39, %v577_v24  ;;  %v140_v27 = vsel %vm139_vm9, %v752_v56, %v136_v19 }
  0xb2   :  { %v114_v11 = vmul.f32 0.5, %v113_v0  ;;  %v273_v20 = vmul.f32 %v140_v27, %v579_v25  ;;  %v130_v45 = vsel %vm129_vm12, %v762_v40, %v126_v3  ;;  %v826_v53 = vand.u32 127, %v309_v52 }
  0xb3   :  { %295 = vmatpush.xpose.msra.mxu0 %v279_v61  ;;  %v272_v36 = vmul.f32 %v130_v45, %v581_v26 }
  0xb4   :  { %v115_v43 = vsub.f32 1.5, %v114_v11  ;;  %vm334_vm1 = vcmp.lt.s32.totalorder %v826_v53, 16  ;;  %vm371_vm6 = vcmp.eq.s32.totalorder %v826_v53, 0  ;;  %vm374_vm7 = vcmp.eq.s32.totalorder %v826_v53, 1 }
  0xb6   :  { %v116_v47 = vmul.f32 %v439_v46, %v115_v43 }
  0xb7   :  { %296 = vmatpush.xpose.msra.mxu0 %v278_v9 }
  0xb8   :  { %v120_v24 = vsel %vm119_vm15, %v439_v46, %v116_v47 }
  0xb9   :  { %v271_v48 = vmul.f32 %v120_v24, %v589_v30 }
  0xbb   :  { %297 = vmatpush.xpose.msra.mxu0 %v277_v21 }
  0xbf   :  { %298 = vmatpush.xpose.msra.mxu0 %v276_v18 }
  0xc3   :  { %299 = vmatpush.xpose.msra.mxu0 %v275_v6 }
  0xc7   :  { %300 = vmatpush.xpose.msra.mxu0 %v274_v29 }
  0xcb   :  { %301 = vmatpush.xpose.msra.mxu0 %v273_v20 }
  0xcf   :  { %302 = vmatpush.xpose.msra.mxu0 %v272_v36 }
  0xd3   :  { %303 = vmatpush.xpose.msra.mxu0 %v271_v48 }
  0xd6   :  { %304 = vmatmul.f32.vlgmr.msra.gmra.mxu0 %v287_v50 }
 0x11a   :  { %v316_v25 = vpop.permute.xlu1 %315 }
 0x11b   :  { %vm317_vm0 = vcmp.eq.s32.totalorder %v826_v53, %v316_v25 }
 0x11c   :  { %vm333_vm3 = vmxor %vm317_vm0, %vm504_vm2 }
 0x11d   :  { %vm335_vm4 = vmand %vm333_vm3, %vm334_vm1 }
 0x153   :  { %v305_v8 = vpop.f32.mrf.mxu0 }
 0x154   :  { %v331_v57 = vmul.f32 1.442695, %v305_v8  ;;  %v318_v26 = vsel %vm317_vm0, %v305_v8, 0.0 }
 0x155   :  { %319 = vadd.xlane.f32.xlu2 %v318_v26 }
 0x156   :  { %440 = vpow2.f32 %v331_v57 }
 0x15c   :  { %v441_v30 = vpop.eup %440 }
 0x15d   :  { %v336_v31 = vsel %vm335_vm4, %v441_v30, 0.0 }
 0x15e   :  { %v337_v54 = vrot.slane %v336_v31, 4 }
 0x160   :  { %v338_v55 = vadd.f32 %v337_v54, %v336_v31 }
 0x162   :  { %v339_v58 = vrot.slane %v338_v55, 2 }
 0x164   :  { %v340_v35 = vadd.f32 %v339_v58, %v338_v55 }
 0x166   :  { %v341_v10 = vrot.slane %v340_v35, 1 }
 0x168   :  { %v342_v56 = vadd.f32 %v341_v10, %v340_v35 }
 0x16a   :  { %v343_v44 = vmul.f32 24.53253, %v342_v56 }
 0x16c   :  { %v358_v12 = vadd.f32 1.0, %v343_v44 }
 0x16e   :  { %442 = vlog2.f32 %v358_v12 }
 0x174   :  { %v443_v59 = vpop.eup %442 }
 0x175   :  { %v360_v61 = vmul.f32 0.6931472, %v443_v59 }
 0x177   :  { %v361_v40 = vsel %vm347_vm5, %v360_v61, 0.0 }
 0x178   :  { %362 = vadd.xlane.f32.xlu2 %v361_v40 }
 0x1c8   :  { %v320_v37 = vpop.xlane.xlu2 %319 }
 0x1c9   :  { %v321_v62 = vsub.f32 3.2, %v320_v37 }
 0x1cb   :  { %v322_v63 = vmul.f32 1.442695, %v321_v62 }
 0x1cd   :  { %444 = vpow2.f32 %v322_v63 }
 0x1d3   :  { %v445_v33 = vpop.eup %444 }
 0x1d4   :  { %v324_v4 = vsel %vm317_vm0, %v445_v33, 0.0 }
 0x1d5   :  { %v325_v13 = vrot.slane %v324_v4, 4 }
 0x1d7   :  { %v326_v1 = vadd.f32 %v325_v13, %v324_v4 }
 0x1d9   :  { %v327_v9 = vrot.slane %v326_v1, 2 }
 0x1db   :  { %v328_v60 = vadd.f32 %v327_v9, %v326_v1 }
 0x1dd   :  { %v329_v51 = vrot.slane %v328_v60, 1 }
 0x1df   :  { %v330_v15 = vadd.f32 %v329_v51, %v328_v60 }
 0x1e1   :  { %v344_v16 = vadd.f32 1.0, %v330_v15 }
 0x1e3   :  { %446 = vlog2.f32 %v344_v16 }
 0x1e9   :  { %v447_v41 = vpop.eup %446 }
 0x1ea   :  { %v346_v46 = vmul.f32 0.6931472, %v447_v41 }
 0x1eb   :  { %v363_v14 = vpop.xlane.xlu2 %362 }
 0x1ec   :  { %v348_v17 = vsel %vm347_vm5, %v346_v46, 0.0  ;;  %v364_v5 = vrot.slane %v363_v14, 4 }
 0x1ed   :  { %349 = vadd.xlane.f32.xlu0 %v348_v17 }
 0x1ee   :  { %v365_v21 = vadd.f32 %v364_v5, %v363_v14 }
 0x1f0   :  { %v366_v22 = vrot.slane %v365_v21, 2 }
 0x1f2   :  { %v367_v28 = vadd.f32 %v366_v22, %v365_v21 }
 0x1f4   :  { %v368_v34 = vrot.slane %v367_v28, 1 }
 0x1f6   :  { %v369_v38 = vadd.f32 %v368_v34, %v367_v28 }
 0x260   :  { %v350_v7 = vpop.xlane.xlu0 %349 }
 0x261   :  { %v351_v49 = vrot.slane %v350_v7, 4 }
 0x263   :  { %v352_v23 = vadd.f32 %v351_v49, %v350_v7 }
 0x265   :  { %v353_v18 = vrot.slane %v352_v23, 2 }
 0x267   :  { %v354_v32 = vadd.f32 %v353_v18, %v352_v23 }
 0x269   :  { %v355_v2 = vrot.slane %v354_v32, 1 }
 0x26b   :  { %v356_v0 = vadd.f32 %v355_v2, %v354_v32 }
 0x26d   :  { %396 = vpush %v356_v0 }
 0x26e   :  { %398 = vpush %v369_v38 }
 0x29e   :  { %s397_s0 = spop %396 }
 0x29f   :  { %v372_v6 = vstv %s397_s0  ;;  %s399_s24 = spop %398 }
 0x2a0   :  { %v373_v42 = vsel %vm371_vm6, %v372_v6, 0.0  ;;  %v375_v11 = vstv %s399_s24 }
 0x2a1   :  { %v376_v39 = vsel %vm374_vm7, %v375_v11, 0.0 }
 0x2a2   :  { %v377_v19 = vadd.f32 %v376_v39, %v373_v42 }
 0x2a4   :  { %378 = vst [vmem:[#allocation5] sm:$0xff] %v377_v19 }
 0x2a5   :  { %389 = dma.vmem_to_hbm [thread:$0]  %s385_s26, 128, %s387_s23, [#allocation4]  }
 0x2a6   :  { %498 = dma.done.wait [#allocation4], 128  }
 0x2a7   :  { %499 = vsyncadd [#allocation4], 4294967168 }
 0x2a8   :  { %394 = vsyncpa [#allocation3], 1 }
 0x2a9   :  { %395 = vsyncpa [#allocation4], 1 }

</bundles_post_ra>
